<compile_context>
chip_gen: v7x
topology: tpu7x:2x2x1
jax: 0.10.0
libtpu: 0.0.40
codegen_flags: <defaults>
</compile_context>

<pallas_src>
import functools

import numpy as np
import jax
import jax.numpy as jnp
from jax.experimental import pallas as pl
from jax.experimental.pallas import tpu as pltpu

SUB = 8      # f32 sublane tile
LANE = 128   # lane tile


def _pad128(v):
    return ((v + LANE - 1) // LANE) * LANE


# ----------------------------------------------------------------------------
# Pallas kernel: fused forward of the whole REN bank (all N RENs at once)
# ----------------------------------------------------------------------------
def ren_bank_kernel(vin_ref, wv_ref, d11t_ref, wx_ref, b1t_ref, einvt_ref,
                    wy_ref, d21t_ref, xn_ref, y_ref, *, l):
    vin = vin_ref[...]                        # (8, KP)  row 0 = [x_flat | u_flat]
    d11t = d11t_ref[...]                      # (LP, LP) block-diag D11_j^T / Lam

    # Loop-invariant part of v (already divided by Lambda via host-side fold).
    base = jnp.dot(vin, wv_ref[...], preferred_element_type=jnp.float32)

    # Deadzone recurrence as l Jacobi sweeps over the strictly-lower-triangular
    # D11: after sweep t, entries 0..t-1 of every REN's epsilon are exact.
    eps = jnp.zeros_like(base)
    for _ in range(l):
        eps = jnp.tanh(base + jnp.dot(eps, d11t,
                                      preferred_element_type=jnp.float32))

    # Post-loop linear maps: single MXU dots on lane-dense padded slabs.
    ex = (jnp.dot(vin, wx_ref[...], preferred_element_type=jnp.float32)
          + jnp.dot(eps, b1t_ref[...], preferred_element_type=jnp.float32))
    xn_ref[...] = jnp.dot(ex, einvt_ref[...], preferred_element_type=jnp.float32)
    y_ref[...] = (jnp.dot(vin, wy_ref[...], preferred_element_type=jnp.float32)
                  + jnp.dot(eps, d21t_ref[...], preferred_element_type=jnp.float32))


def ren_bank_forward(kernel_inputs, l, Nn, Np):
    NP_, PP = _pad128(Nn), _pad128(Np)
    xn_pad, y_pad = pl.pallas_call(
        functools.partial(ren_bank_kernel, l=l),
        out_shape=(jax.ShapeDtypeStruct((SUB, NP_), jnp.float32),
                   jax.ShapeDtypeStruct((SUB, PP), jnp.float32)),
        compiler_params=pltpu.CompilerParams(
            vmem_limit_bytes=32 * 1024 * 1024),
    )(*kernel_inputs)
    return xn_pad[0, :Nn], y_pad[0, :Np]      # x_next_flat (Nn,), y_flat (Np,)


# ----------------------------------------------------------------------------
# Plain-JAX glue: REN parameter init + set_param (parameterization)
# ----------------------------------------------------------------------------
def init_ren_params(key, m, p, n, l):
    std = 0.01
    ks = jax.random.split(key, 9)
    f32 = jnp.float32
    return dict(
        x0=(jax.random.normal(ks[0], (1, n)) * std).astype(f32),
        X=(jax.random.normal(ks[1], (2 * n + l, 2 * n + l)) * std).astype(f32),
        Y=(jax.random.normal(ks[2], (n, n)) * std).astype(f32),
        Z3=(jax.random.normal(ks[3], (abs(p - m), min(p, m))) * std).astype(f32),
        X3=(jax.random.normal(ks[4], (min(p, m), min(p, m))) * std).astype(f32),
        Y3=(jax.random.normal(ks[5], (min(p, m), min(p, m))) * std).astype(f32),
        D12=jax.random.normal(ks[6], (l, m)).astype(f32),
        B2=(jax.random.normal(ks[7], (n, m)) * std).astype(f32),
        C2=(jax.random.normal(ks[8], (p, n)) * std).astype(f32),
    )


def ren_set_param(params, gamma, m, p, n, l, epsilon=1e-3):
    # mode == 'l2stable'
    g = jnp.reshape(gamma, ()).astype(jnp.float32)
    Q = -(1.0 / g) * jnp.eye(p, dtype=jnp.float32)
    R = g * jnp.eye(m, dtype=jnp.float32)
    S = jnp.zeros((m, p), jnp.float32)

    X3, Y3, Z3 = params['X3'], params['Y3'], params['Z3']
    X, Y = params['X'], params['Y']
    B2, C2, D12 = params['B2'], params['C2'], params['D12']
    D21 = jnp.zeros((p, l), jnp.float32)

    M = (X3.T @ X3 + Y3 - Y3.T + Z3.T @ Z3
         + epsilon * jnp.eye(min(m, p), dtype=jnp.float32))
    if p >= m:
        inv_IM = jnp.linalg.inv(jnp.eye(m, dtype=jnp.float32) + M)
        Nmat = jnp.vstack(((jnp.eye(m, dtype=jnp.float32) - M) @ inv_IM,
                           -2.0 * Z3 @ inv_IM))
    else:
        inv_IM = jnp.linalg.inv(jnp.eye(p, dtype=jnp.float32) + M)
        Nmat = jnp.hstack((inv_IM @ (jnp.eye(p, dtype=jnp.float32) - M),
                           -2.0 * inv_IM @ Z3.T))

    Lq = jnp.linalg.cholesky(-Q).T
    Lr = jnp.linalg.cholesky(R - S @ jnp.linalg.inv(Q) @ S.T).T
    D22 = -jnp.linalg.inv(Q) @ S.T + jnp.linalg.inv(Lq) @ Nmat @ Lr

    R_cal = R + S @ D22 + (S @ D22).T + D22.T @ Q @ D22
    R_cal_inv = jnp.linalg.inv(R_cal)
    C2_cal = ((D22.T @ Q + S) @ C2).T
    D21_cal = ((D22.T @ Q + S) @ D21).T - D12
    vec_r = jnp.concatenate((C2_cal, D21_cal, B2), axis=0)
    psi_r = vec_r @ R_cal_inv @ vec_r.T
    vec_q = jnp.concatenate((C2.T, D21.T, jnp.zeros((n, p), jnp.float32)), axis=0)
    psi_q = vec_q @ Q @ vec_q.T

    H = X.T @ X + epsilon * jnp.eye(2 * n + l, dtype=jnp.float32) + psi_r - psi_q
    H11 = H[:n, :n]
    H21 = H[n:n + l, :n]
    H22 = H[n:n + l, n:n + l]
    H31 = H[n + l:, :n]
    H32 = H[n + l:, n:n + l]
    H33 = H[n + l:, n + l:]

    P_cal = H33
    Fm = H31
    B1 = H32
    E = 0.5 * (H11 + P_cal + Y - Y.T)
    Lam = 0.5 * jnp.diag(H22)
    D11 = -jnp.tril(H22, k=-1)
    C1 = -H21
    return dict(F=Fm, B1=B1, B2=B2, Einv=jnp.linalg.inv(E), C1=C1,
                D11=D11, D12=D12, Lam=Lam, C2=C2, D21=D21, D22=D22)


# ----------------------------------------------------------------------------
# NetworkedRENs.forward
# ----------------------------------------------------------------------------
def networked_rens_forward(t, d, x, net):
    Muy, Mud, Mey = net['Muy'], net['Mud'], net['Mey']
    N = net['N']
    m, p, n, l = net['m'], net['p'], net['n'], net['l']
    s, gammaw = net['s'], net['gammaw']

    # Homogeneous REN sizes required to batch all RENs in one kernel step.
    n0, l0, m0, p0 = n[0], l[0], m[0], p[0]
    assert all(v == n0 for v in n) and all(v == l0 for v in l)
    assert all(v == m0 for v in m) and all(v == p0 for v in p)
    Nn, Nl, Nm, Np = N * n0, N * l0, N * m0, N * p0

    Hnet = Mey.T @ Mey
    s_abs = jnp.abs(s)
    gw2 = gammaw ** 2

    # Static index-set bookkeeping on concrete interconnection matrices.
    Mud_np = np.asarray(Mud)
    row_sum = Mud_np.sum(axis=1)
    A1t = set(np.nonzero(row_sum == 1)[0].tolist())
    A0t = set(np.nonzero(row_sum == 0)[0].tolist())

    gamma_list = []
    for j in range(N):
        ui = list(range(j * m0, (j + 1) * m0))
        yi = list(range(j * p0, (j + 1) * p0))
        A1 = sorted(set(ui) & A1t)
        A0 = sorted(set(ui) & A0t)
        colmax = jnp.max(jnp.stack([jnp.sum(Muy[:, i]) for i in yi]))
        a = Hnet[j, j] + colmax + s_abs[j]
        # Guard: reference assumes A0 non-empty; empty -> no 1/rowmax_A0 bound.
        inv_r0 = (1.0 / jnp.max(jnp.stack([jnp.sum(Muy[i, :]) for i in A0]))
                  if len(A0) else jnp.asarray(jnp.inf, jnp.float32))
        if len(A1) != 0:
            rowmax_A1 = jnp.max(jnp.stack([jnp.sum(Muy[i, :]) for i in A1]))
            gamma = jnp.sqrt((1.0 / a) * jnp.minimum(
                gw2 / (rowmax_A1 * gw2 + 1.0), inv_r0))
        else:
            gamma = jnp.sqrt((1.0 / a) * inv_r0)
        gamma_list.append(jnp.reshape(gamma, (1,)))

    # Vectorized re-parameterization: vmap set_param over the N RENs.
    stacked_params = {k: jnp.stack([rp_[k] for rp_ in net['ren_params']])
                      for k in net['ren_params'][0]}
    gamma_vec = jnp.stack(gamma_list)                       # (N, 1)
    rp = jax.vmap(
        lambda prm, g: ren_set_param(prm, g, m0, p0, n0, l0)
    )(stacked_params, gamma_vec)

    # Coupled network input: u = (I - Muy D22)^{-1} (Muy C2 x + Mud d)
    C2blk = jax.scipy.linalg.block_diag(*[rp['C2'][j] for j in range(N)])
    D22blk = jax.scipy.linalg.block_diag(*[rp['D22'][j] for j in range(N)])
    A = jnp.eye(Nm, dtype=jnp.float32) - Muy @ D22blk
    u = jnp.linalg.solve(A, Muy @ C2blk @ x + Mud @ d)

    # Pack kernel inputs: pre-transposed block-diagonal weight slabs, padded to
    # lane-dense (multiple-of-128) minor dims, so every in-kernel contraction
    # is one MXU dot and every store is a full unmasked tile.
    KP, LP, NP_, PP = _pad128(Nn + Nm), _pad128(Nl), _pad128(Nn), _pad128(Np)

    def bd_t(Ws):   # (N, out, in) -> block_diag(W_0^T, ..., W_{N-1}^T)
        return jax.scipy.linalg.block_diag(*[Ws[j].T for j in range(N)])

    def place(mat, rows, cols):
        out = jnp.zeros((rows, cols), jnp.float32)
        return out.at[:mat.shape[0], :mat.shape[1]].set(mat)

    inv_lam = (1.0 / rp['Lam']).reshape(-1)                 # (Nl,), exact 1/Lambda

    # 1/Lambda folded into the columns feeding the tanh (Wv and D11t).
    Wv_raw = (jnp.concatenate([bd_t(rp['C1']), bd_t(rp['D12'])], axis=0)
              * inv_lam[None, :])                           # (Nn+Nm, Nl)
    D11t_raw = bd_t(rp['D11']) * inv_lam[None, :]           # (Nl, Nl)
    Wx_raw = jnp.concatenate([bd_t(rp['F']), bd_t(rp['B2'])], axis=0)   # (Nn+Nm, Nn)
    Wy_raw = jnp.concatenate([bd_t(rp['C2']), bd_t(rp['D22'])], axis=0)  # (Nn+Nm, Np)
    B1t_raw = bd_t(rp['B1'])                                # (Nl, Nn)
    Einvt_raw = bd_t(rp['Einv'])                            # (Nn, Nn)
    D21t_raw = bd_t(rp['D21'])                              # (Nl, Np)

    Wv = place(Wv_raw, KP, LP)
    D11t = place(D11t_raw, LP, LP)
    Wx = place(Wx_raw, KP, NP_)
    B1t = place(B1t_raw, LP, NP_)
    Einvt = place(Einvt_raw, NP_, NP_)
    Wy = place(Wy_raw, KP, PP)
    D21t = place(D21t_raw, LP, PP)

    # vin padded to a full (8, 128) tile; only row 0 is meaningful.
    vin = (jnp.zeros((SUB, KP), jnp.float32)
           .at[0, :Nn].set(x.astype(jnp.float32))
           .at[0, Nn:Nn + Nm].set(u.astype(jnp.float32)))

    # NOTE: bias=False in REN.__init__ -> decay**t * bias == 0 exactly; the
    # bias path (and its unaligned lane slices) is omitted from the kernel.
    kernel_inputs = (vin, Wv, D11t, Wx, B1t, Einvt, Wy, D21t)
    x_next, y = ren_bank_forward(kernel_inputs, l0, Nn, Np)

    e = Mey @ y
    gammawout = gammaw ** 2
    return e, x_next, gamma_list, gammawout


# ----------------------------------------------------------------------------
if __name__ == "__main__":
    key = jax.random.PRNGKey(0)
    N = 2
    m = [4, 4]
    p = [4, 4]
    n = [8, 8]
    l = [8, 8]
    m_sum, p_sum, n_sum = sum(m), sum(p), sum(n)
    d_dim = 4
    e_dim = 6

    k_s, k_gw, k_d, k_x, k_r0, k_r1 = jax.random.split(key, 6)
    s = jax.random.normal(k_s, (N,)).astype(jnp.float32)
    gammaw = (15.0 * jax.random.normal(k_gw, (1,))).astype(jnp.float32)
    ren_params = [init_ren_params(k, m[j], p[j], n[j], l[j])
                  for j, k in enumerate([k_r0, k_r1])]

    # Deterministic interconnection matrices. Each REN's input-index range
    # intersects both {rows of Mud with sum 1} and {rows with sum 0}.
    Muy = jnp.full((m_sum, p_sum), 0.1, dtype=jnp.float32)
    Mud_np = np.zeros((m_sum, d_dim), dtype=np.float32)
    Mud_np[0, 0] = 1.0
    Mud_np[1, 1] = 1.0
    Mud_np[4, 2] = 1.0
    Mud_np[5, 3] = 1.0
    Mud = jnp.asarray(Mud_np)
    Mey = jnp.asarray(
        np.arange(e_dim * p_sum, dtype=np.float32).reshape(e_dim, p_sum)
        / (e_dim * p_sum))

    net = dict(N=N, m=m, p=p, n=n, l=l, Muy=Muy, Mud=Mud, Mey=Mey,
               s=s, gammaw=gammaw, ren_params=ren_params)

    d = jax.random.normal(k_d, (d_dim,)).astype(jnp.float32)
    x = jax.random.normal(k_x, (n_sum,)).astype(jnp.float32)
    t = 3

    e, x_, gamma_list, gammawout = networked_rens_forward(t, d, x, net)
    jax.block_until_ready((e, x_, gammawout))
    print("KERNEL_OK")
</pallas_src>

<mosaic_0001>
module attributes {stable_mosaic.version = 11 : i64} {
  func.func @ren_bank_kernel(%arg0: memref<8x128xf32, #tpu.memory_space<vmem>>, %arg1: memref<128x128xf32, #tpu.memory_space<vmem>>, %arg2: memref<128x128xf32, #tpu.memory_space<vmem>>, %arg3: memref<128x128xf32, #tpu.memory_space<vmem>>, %arg4: memref<128x128xf32, #tpu.memory_space<vmem>>, %arg5: memref<128x128xf32, #tpu.memory_space<vmem>>, %arg6: memref<128x128xf32, #tpu.memory_space<vmem>>, %arg7: memref<128x128xf32, #tpu.memory_space<vmem>>, %arg8: memref<8x128xf32, #tpu.memory_space<vmem>>, %arg9: memref<8x128xf32, #tpu.memory_space<vmem>>) attributes {dimension_semantics = [], scalar_prefetch = 0 : i64, scratch_operands = 0 : i64, tpu.core_type = #tpu.core_type<tc>} {
    %c0 = arith.constant 0 : index
    %c0_0 = arith.constant 0 : index
    %0 = vector.load %arg0[%c0, %c0_0] : memref<8x128xf32, #tpu.memory_space<vmem>>, vector<8x128xf32>
    %c0_1 = arith.constant 0 : index
    %c0_2 = arith.constant 0 : index
    %1 = vector.load %arg2[%c0_1, %c0_2] : memref<128x128xf32, #tpu.memory_space<vmem>>, vector<128x128xf32>
    %c0_3 = arith.constant 0 : index
    %c0_4 = arith.constant 0 : index
    %2 = vector.load %arg1[%c0_3, %c0_4] : memref<128x128xf32, #tpu.memory_space<vmem>>, vector<128x128xf32>
    %cst = arith.constant dense<0.000000e+00> : vector<8x128xf32>
    %3 = tpu.matmul %0, %2, %cst {dimension_numbers = #tpu.dot_dimension_numbers<[1], [0], [0], [1], [0, 0, 1, 1], [], []>} : vector<8x128xf32>, vector<128x128xf32>, vector<8x128xf32> -> vector<8x128xf32>
    %cst_5 = arith.constant 0.000000e+00 : f32
    %4 = vector.broadcast %cst_5 : f32 to vector<8x128xf32>
    %cst_6 = arith.constant dense<0.000000e+00> : vector<8x128xf32>
    %5 = tpu.matmul %4, %1, %cst_6 {dimension_numbers = #tpu.dot_dimension_numbers<[1], [0], [0], [1], [0, 0, 1, 1], [], []>} : vector<8x128xf32>, vector<128x128xf32>, vector<8x128xf32> -> vector<8x128xf32>
    %6 = arith.addf %3, %5 : vector<8x128xf32>
    %7 = math.tanh %6 : vector<8x128xf32>
    %cst_7 = arith.constant dense<0.000000e+00> : vector<8x128xf32>
    %8 = tpu.matmul %7, %1, %cst_7 {dimension_numbers = #tpu.dot_dimension_numbers<[1], [0], [0], [1], [0, 0, 1, 1], [], []>} : vector<8x128xf32>, vector<128x128xf32>, vector<8x128xf32> -> vector<8x128xf32>
    %9 = arith.addf %3, %8 : vector<8x128xf32>
    %10 = math.tanh %9 : vector<8x128xf32>
    %cst_8 = arith.constant dense<0.000000e+00> : vector<8x128xf32>
    %11 = tpu.matmul %10, %1, %cst_8 {dimension_numbers = #tpu.dot_dimension_numbers<[1], [0], [0], [1], [0, 0, 1, 1], [], []>} : vector<8x128xf32>, vector<128x128xf32>, vector<8x128xf32> -> vector<8x128xf32>
    %12 = arith.addf %3, %11 : vector<8x128xf32>
    %13 = math.tanh %12 : vector<8x128xf32>
    %cst_9 = arith.constant dense<0.000000e+00> : vector<8x128xf32>
    %14 = tpu.matmul %13, %1, %cst_9 {dimension_numbers = #tpu.dot_dimension_numbers<[1], [0], [0], [1], [0, 0, 1, 1], [], []>} : vector<8x128xf32>, vector<128x128xf32>, vector<8x128xf32> -> vector<8x128xf32>
    %15 = arith.addf %3, %14 : vector<8x128xf32>
    %16 = math.tanh %15 : vector<8x128xf32>
    %cst_10 = arith.constant dense<0.000000e+00> : vector<8x128xf32>
    %17 = tpu.matmul %16, %1, %cst_10 {dimension_numbers = #tpu.dot_dimension_numbers<[1], [0], [0], [1], [0, 0, 1, 1], [], []>} : vector<8x128xf32>, vector<128x128xf32>, vector<8x128xf32> -> vector<8x128xf32>
    %18 = arith.addf %3, %17 : vector<8x128xf32>
    %19 = math.tanh %18 : vector<8x128xf32>
    %cst_11 = arith.constant dense<0.000000e+00> : vector<8x128xf32>
    %20 = tpu.matmul %19, %1, %cst_11 {dimension_numbers = #tpu.dot_dimension_numbers<[1], [0], [0], [1], [0, 0, 1, 1], [], []>} : vector<8x128xf32>, vector<128x128xf32>, vector<8x128xf32> -> vector<8x128xf32>
    %21 = arith.addf %3, %20 : vector<8x128xf32>
    %22 = math.tanh %21 : vector<8x128xf32>
    %cst_12 = arith.constant dense<0.000000e+00> : vector<8x128xf32>
    %23 = tpu.matmul %22, %1, %cst_12 {dimension_numbers = #tpu.dot_dimension_numbers<[1], [0], [0], [1], [0, 0, 1, 1], [], []>} : vector<8x128xf32>, vector<128x128xf32>, vector<8x128xf32> -> vector<8x128xf32>
    %24 = arith.addf %3, %23 : vector<8x128xf32>
    %25 = math.tanh %24 : vector<8x128xf32>
    %cst_13 = arith.constant dense<0.000000e+00> : vector<8x128xf32>
    %26 = tpu.matmul %25, %1, %cst_13 {dimension_numbers = #tpu.dot_dimension_numbers<[1], [0], [0], [1], [0, 0, 1, 1], [], []>} : vector<8x128xf32>, vector<128x128xf32>, vector<8x128xf32> -> vector<8x128xf32>
    %27 = arith.addf %3, %26 : vector<8x128xf32>
    %28 = math.tanh %27 : vector<8x128xf32>
    %c0_14 = arith.constant 0 : index
    %c0_15 = arith.constant 0 : index
    %29 = vector.load %arg3[%c0_14, %c0_15] : memref<128x128xf32, #tpu.memory_space<vmem>>, vector<128x128xf32>
    %cst_16 = arith.constant dense<0.000000e+00> : vector<8x128xf32>
    %30 = tpu.matmul %0, %29, %cst_16 {dimension_numbers = #tpu.dot_dimension_numbers<[1], [0], [0], [1], [0, 0, 1, 1], [], []>} : vector<8x128xf32>, vector<128x128xf32>, vector<8x128xf32> -> vector<8x128xf32>
    %c0_17 = arith.constant 0 : index
    %c0_18 = arith.constant 0 : index
    %31 = vector.load %arg4[%c0_17, %c0_18] : memref<128x128xf32, #tpu.memory_space<vmem>>, vector<128x128xf32>
    %cst_19 = arith.constant dense<0.000000e+00> : vector<8x128xf32>
    %32 = tpu.matmul %28, %31, %cst_19 {dimension_numbers = #tpu.dot_dimension_numbers<[1], [0], [0], [1], [0, 0, 1, 1], [], []>} : vector<8x128xf32>, vector<128x128xf32>, vector<8x128xf32> -> vector<8x128xf32>
    %33 = arith.addf %30, %32 : vector<8x128xf32>
    %c0_20 = arith.constant 0 : index
    %c0_21 = arith.constant 0 : index
    %34 = vector.load %arg5[%c0_20, %c0_21] : memref<128x128xf32, #tpu.memory_space<vmem>>, vector<128x128xf32>
    %cst_22 = arith.constant dense<0.000000e+00> : vector<8x128xf32>
    %35 = tpu.matmul %33, %34, %cst_22 {dimension_numbers = #tpu.dot_dimension_numbers<[1], [0], [0], [1], [0, 0, 1, 1], [], []>} : vector<8x128xf32>, vector<128x128xf32>, vector<8x128xf32> -> vector<8x128xf32>
    %c0_23 = arith.constant 0 : index
    %c0_24 = arith.constant 0 : index
    %36 = vector.load %arg8[%c0_23, %c0_24] : memref<8x128xf32, #tpu.memory_space<vmem>>, vector<8x128xf32>
    tpu.vector_store %arg8[%c0_23, %c0_24], %35 {strides = array<i32>} : memref<8x128xf32, #tpu.memory_space<vmem>>, vector<8x128xf32>,
    %c0_25 = arith.constant 0 : index
    %c0_26 = arith.constant 0 : index
    %37 = vector.load %arg6[%c0_25, %c0_26] : memref<128x128xf32, #tpu.memory_space<vmem>>, vector<128x128xf32>
    %cst_27 = arith.constant dense<0.000000e+00> : vector<8x128xf32>
    %38 = tpu.matmul %0, %37, %cst_27 {dimension_numbers = #tpu.dot_dimension_numbers<[1], [0], [0], [1], [0, 0, 1, 1], [], []>} : vector<8x128xf32>, vector<128x128xf32>, vector<8x128xf32> -> vector<8x128xf32>
    %c0_28 = arith.constant 0 : index
    %c0_29 = arith.constant 0 : index
    %39 = vector.load %arg7[%c0_28, %c0_29] : memref<128x128xf32, #tpu.memory_space<vmem>>, vector<128x128xf32>
    %cst_30 = arith.constant dense<0.000000e+00> : vector<8x128xf32>
    %40 = tpu.matmul %28, %39, %cst_30 {dimension_numbers = #tpu.dot_dimension_numbers<[1], [0], [0], [1], [0, 0, 1, 1], [], []>} : vector<8x128xf32>, vector<128x128xf32>, vector<8x128xf32> -> vector<8x128xf32>
    %41 = arith.addf %38, %40 : vector<8x128xf32>
    %c0_31 = arith.constant 0 : index
    %c0_32 = arith.constant 0 : index
    %42 = vector.load %arg9[%c0_31, %c0_32] : memref<8x128xf32, #tpu.memory_space<vmem>>, vector<8x128xf32>
    tpu.vector_store %arg9[%c0_31, %c0_32], %41 {strides = array<i32>} : memref<8x128xf32, #tpu.memory_space<vmem>>, vector<8x128xf32>,
    return
  }
}

</mosaic_0001>

<bundles_post_ra>
// kernel: tpu_custom_call.1
= control target key start
LH: loop header
LB: loop body
LE: loop exit
PB: predicated region body
PF: predicated region fallthrough
CT: control target
= control target key end

     0   :  { %15 = vsyncpa [#allocation3], 0  ;;  %s3063_s0 = inlined_call_operand.hbm [shape: f32[8,128], index: 0, kind: input, shape index: {}]   ;;  %s3064_s1 = inlined_call_operand.hbm [shape: f32[128,128], index: 1, kind: input, shape index: {}]   ;;  %s3065_s2 = inlined_call_operand.hbm [shape: f32[128,128], index: 2, kind: input, shape index: {}]   ;;  %s3066_s3 = inlined_call_operand.hbm [shape: f32[128,128], index: 3, kind: input, shape index: {}]   ;;  %s3067_s4 = inlined_call_operand.hbm [shape: f32[128,128], index: 4, kind: input, shape index: {}]   ;;  %s3068_s5 = inlined_call_operand.hbm [shape: f32[128,128], index: 5, kind: input, shape index: {}]   ;;  %s3069_s6 = inlined_call_operand.hbm [shape: f32[128,128], index: 6, kind: input, shape index: {}]   ;;  %s3070_s7 = inlined_call_operand.hbm [shape: f32[128,128], index: 7, kind: input, shape index: {}]   ;;  %s3071_s8 = inlined_call_operand.hbm [shape: f32[8,128], index: 8, kind: output, shape index: {0}]   ;;  %s3072_s9 = inlined_call_operand.hbm [shape: f32[8,128], index: 9, kind: output, shape index: {1}]  }
   0x1   :  { %16 = vsyncpa [#allocation6], 0 }
   0x2   :  { %17 = vsyncpa [#allocation9], 0 }
   0x3   :  { %18 = vsyncpa [#allocation12], 0 }
   0x4   :  { %19 = vsyncpa [#allocation15], 0 }
   0x5   :  { %20 = vsyncpa [#allocation4], 0 }
   0x6   :  { %21 = vsyncpa [#allocation18], 0  ;;  %s2617_s30 = smov [#allocation5]   ;;  %s2383_s13 = scalar_lea.hbm %s3064_s1, 2048 }
   0x7   :  { %s37_s10 = sshll.u32 %s2617_s30, 4  ;;  %p2384_p0 = scmp.ne.s32.totalorder %s3064_s1, %s2383_s13  ;;  %s38_s10 = int_to_ptr.vmem [resolvable:$true] %s37_s10 }
   0x8   :  { %p2387_p1 = scmp.lt.u32.totalorder %s2383_s13, %s3064_s1 }
   0xa   :  { %p2389_p2 = pnand %p2387_p1, %p2384_p0 }
   0xc   :  { %2392 = shalt.err (!%p2389_p2)
}
   0xd   :  { %s2393_s18 = scalar_lea.vmem %s38_s10, 2048  ;;  %p2398_p4 = scmp.lt.s32.totalorder %s38_s10, %s38_s10 }
   0xe   :  { %p2394_p3 = scmp.ne.s32.totalorder %s38_s10, %s2393_s18  ;;  %p2399_p5 = scmp.lt.s32.totalorder %s2393_s18, %s2393_s18 }
  0x10   :  { %p2400_p6 = por %p2399_p5, %p2398_p4 }
  0x12   :  { %p2401_p7 = pnand %p2400_p6, %p2394_p3 }
  0x14   :  { %2404 = shalt.err (!%p2401_p7)
}
  0x15   :  { %s2618_s19 = smov 128   ;;  %s2619_s20 = smov 8  }
  0x16   :  { %43 = dma.hbm_to_vmem [thread:$0]  %s3064_s1, 2048, %s38_s10, [#allocation6], %s2618_s19, %s2618_s19, %s2619_s20  }
  0x17   :  { %s2620_s23 = smov [#allocation8]   ;;  %s2621_s25 = smov [#allocation11]  }
  0x18   :  { %s61_s24 = sshll.u32 %s2620_s23, 4  ;;  %s85_s26 = sshll.u32 %s2621_s25, 4  ;;  %s62_s24 = int_to_ptr.vmem [resolvable:$true] %s61_s24  ;;  %s86_s26 = int_to_ptr.vmem [resolvable:$true] %s85_s26 }
  0x19   :  { %s2405_s29 = scalar_lea.hbm %s3066_s3, 2048 }
  0x1a   :  { %p2406_p8 = scmp.ne.s32.totalorder %s3066_s3, %s2405_s29  ;;  %p2409_p9 = scmp.lt.u32.totalorder %s2405_s29, %s3066_s3 }
  0x1c   :  { %p2411_p10 = pnand %p2409_p9, %p2406_p8 }
  0x1e   :  { %2414 = shalt.err (!%p2411_p10)
}
  0x1f   :  { %s2415_s1 = scalar_lea.vmem %s62_s24, 2048  ;;  %p2420_p12 = scmp.lt.s32.totalorder %s62_s24, %s62_s24 }
  0x20   :  { %p2416_p11 = scmp.ne.s32.totalorder %s62_s24, %s2415_s1  ;;  %p2421_p13 = scmp.lt.s32.totalorder %s2415_s1, %s2415_s1 }
  0x22   :  { %p2422_p0 = por %p2421_p13, %p2420_p12 }
  0x24   :  { %p2423_p1 = pnand %p2422_p0, %p2416_p11 }
  0x26   :  { %2426 = shalt.err (!%p2423_p1)
}
  0x27   :  { %67 = dma.hbm_to_vmem [thread:$0]  %s3066_s3, 2048, %s62_s24, [#allocation9], %s2618_s19, %s2618_s19, %s2619_s20  }
  0x28   :  { %s2427_s17 = scalar_lea.hbm %s3068_s5, 2048 }
  0x29   :  { %p2428_p2 = scmp.ne.s32.totalorder %s3068_s5, %s2427_s17  ;;  %p2431_p3 = scmp.lt.u32.totalorder %s2427_s17, %s3068_s5 }
  0x2b   :  { %p2433_p4 = pnand %p2431_p3, %p2428_p2 }
  0x2d   :  { %2436 = shalt.err (!%p2433_p4)
}
  0x2e   :  { %s2437_s25 = scalar_lea.vmem %s86_s26, 2048  ;;  %p2442_p6 = scmp.lt.s32.totalorder %s86_s26, %s86_s26 }
  0x2f   :  { %p2438_p5 = scmp.ne.s32.totalorder %s86_s26, %s2437_s25  ;;  %p2443_p7 = scmp.lt.s32.totalorder %s2437_s25, %s2437_s25 }
  0x31   :  { %p2444_p8 = por %p2443_p7, %p2442_p6 }
  0x33   :  { %p2445_p9 = pnand %p2444_p8, %p2438_p5 }
  0x35   :  { %2448 = shalt.err (!%p2445_p9)
}
  0x36   :  { %91 = dma.hbm_to_vmem [thread:$0]  %s3068_s5, 2048, %s86_s26, [#allocation12], %s2618_s19, %s2618_s19, %s2619_s20  }
  0x37   :  { %s2622_s27 = smov [#allocation2]   ;;  %s2623_s29 = smov [#allocation7]  }
  0x38   :  { %s28_s28 = sshll.u32 %s2622_s27, 4  ;;  %s49_s30 = sshll.u32 %s2623_s29, 4  ;;  %s29_s28 = int_to_ptr.vmem [resolvable:$true] %s28_s28  ;;  %s50_s30 = int_to_ptr.vmem [resolvable:$true] %s49_s30 }
  0x39   :  { %s2449_s13 = scalar_lea.hbm %s3063_s0, 128 }
  0x3a   :  { %p2450_p10 = scmp.ne.s32.totalorder %s3063_s0, %s2449_s13  ;;  %p2453_p11 = scmp.lt.u32.totalorder %s2449_s13, %s3063_s0 }
  0x3c   :  { %p2455_p12 = pnand %p2453_p11, %p2450_p10 }
  0x3e   :  { %2458 = shalt.err (!%p2455_p12)
}
  0x3f   :  { %s2459_s5 = scalar_lea.vmem %s29_s28, 128  ;;  %p2464_p0 = scmp.lt.s32.totalorder %s29_s28, %s29_s28 }
  0x40   :  { %p2460_p13 = scmp.ne.s32.totalorder %s29_s28, %s2459_s5  ;;  %p2465_p1 = scmp.lt.s32.totalorder %s2459_s5, %s2459_s5 }
  0x42   :  { %p2466_p2 = por %p2465_p1, %p2464_p0 }
  0x44   :  { %p2467_p3 = pnand %p2466_p2, %p2460_p13 }
  0x46   :  { %2470 = shalt.err (!%p2467_p3)
}
  0x47   :  { %31 = dma.hbm_to_vmem [thread:$0]  %s3063_s0, 128, %s29_s28, [#allocation3]  }
  0x48   :  { %s2471_s21 = scalar_lea.hbm %s3065_s2, 2048 }
  0x49   :  { %p2472_p4 = scmp.ne.s32.totalorder %s3065_s2, %s2471_s21  ;;  %p2475_p5 = scmp.lt.u32.totalorder %s2471_s21, %s3065_s2 }
  0x4b   :  { %p2477_p6 = pnand %p2475_p5, %p2472_p4 }
  0x4d   :  { %2480 = shalt.err (!%p2477_p6)
}
  0x4e   :  { %s2481_s24 = scalar_lea.vmem %s50_s30, 2048  ;;  %p2486_p8 = scmp.lt.s32.totalorder %s50_s30, %s50_s30 }
  0x4f   :  { %p2482_p7 = scmp.ne.s32.totalorder %s50_s30, %s2481_s24  ;;  %p2487_p9 = scmp.lt.s32.totalorder %s2481_s24, %s2481_s24 }
  0x51   :  { %p2488_p10 = por %p2487_p9, %p2486_p8 }
  0x53   :  { %p2489_p11 = pnand %p2488_p10, %p2482_p7 }
  0x55   :  { %2492 = shalt.err (!%p2489_p11)
}
  0x56   :  { %55 = dma.hbm_to_vmem [thread:$0]  %s3065_s2, 2048, %s50_s30, [#allocation6], %s2618_s19, %s2618_s19, %s2619_s20  }
  0x57   :  { %s2624_s28 = smov [#allocation10]   ;;  %s2625_s11 = smov [#allocation13]  }
  0x58   :  { %s73_s29 = sshll.u32 %s2624_s28, 4  ;;  %s97_s12 = sshll.u32 %s2625_s11, 4  ;;  %s74_s29 = int_to_ptr.vmem [resolvable:$true] %s73_s29  ;;  %s98_s12 = int_to_ptr.vmem [resolvable:$true] %s97_s12 }
  0x59   :  { %s2493_s10 = scalar_lea.hbm %s3067_s4, 2048 }
  0x5a   :  { %p2494_p12 = scmp.ne.s32.totalorder %s3067_s4, %s2493_s10  ;;  %p2497_p13 = scmp.lt.u32.totalorder %s2493_s10, %s3067_s4 }
  0x5c   :  { %p2499_p0 = pnand %p2497_p13, %p2494_p12 }
  0x5e   :  { %2502 = shalt.err (!%p2499_p0)
}
  0x5f   :  { %s2503_s2 = scalar_lea.vmem %s74_s29, 2048  ;;  %p2508_p2 = scmp.lt.s32.totalorder %s74_s29, %s74_s29 }
  0x60   :  { %p2504_p1 = scmp.ne.s32.totalorder %s74_s29, %s2503_s2  ;;  %p2509_p3 = scmp.lt.s32.totalorder %s2503_s2, %s2503_s2 }
  0x62   :  { %p2510_p4 = por %p2509_p3, %p2508_p2 }
  0x64   :  { %p2511_p5 = pnand %p2510_p4, %p2504_p1 }
  0x66   :  { %2514 = shalt.err (!%p2511_p5)
}
  0x67   :  { %79 = dma.hbm_to_vmem [thread:$0]  %s3067_s4, 2048, %s74_s29, [#allocation9], %s2618_s19, %s2618_s19, %s2619_s20  }
  0x68   :  { %s2515_s21 = scalar_lea.hbm %s3069_s6, 2048 }
  0x69   :  { %p2516_p6 = scmp.ne.s32.totalorder %s3069_s6, %s2515_s21  ;;  %p2519_p7 = scmp.lt.u32.totalorder %s2515_s21, %s3069_s6 }
  0x6b   :  { %p2521_p8 = pnand %p2519_p7, %p2516_p6 }
  0x6d   :  { %2524 = shalt.err (!%p2521_p8)
}
  0x6e   :  { %s2525_s24 = scalar_lea.vmem %s98_s12, 2048  ;;  %p2530_p10 = scmp.lt.s32.totalorder %s98_s12, %s98_s12 }
  0x6f   :  { %p2526_p9 = scmp.ne.s32.totalorder %s98_s12, %s2525_s24  ;;  %p2531_p11 = scmp.lt.s32.totalorder %s2525_s24, %s2525_s24 }
  0x71   :  { %p2532_p12 = por %p2531_p11, %p2530_p10 }
  0x73   :  { %p2533_p13 = pnand %p2532_p12, %p2526_p9 }
  0x75   :  { %2536 = shalt.err (!%p2533_p13)
}
  0x76   :  { %103 = dma.hbm_to_vmem [thread:$0]  %s3069_s6, 2048, %s98_s12, [#allocation12], %s2618_s19, %s2618_s19, %s2619_s20  }
  0x77   :  { %s2626_s27 = smov [#allocation14]   ;;  %s2537_s13 = scalar_lea.hbm %s3070_s7, 2048 }
  0x78   :  { %s109_s28 = sshll.u32 %s2626_s27, 4  ;;  %p2538_p0 = scmp.ne.s32.totalorder %s3070_s7, %s2537_s13  ;;  %s110_s28 = int_to_ptr.vmem [resolvable:$true] %s109_s28 }
  0x79   :  { %p2541_p1 = scmp.lt.u32.totalorder %s2537_s13, %s3070_s7 }
  0x7b   :  { %p2543_p2 = pnand %p2541_p1, %p2538_p0 }
  0x7d   :  { %2546 = shalt.err (!%p2543_p2)
}
  0x7e   :  { %s2547_s5 = scalar_lea.vmem %s110_s28, 2048  ;;  %p2552_p4 = scmp.lt.s32.totalorder %s110_s28, %s110_s28 }
  0x7f   :  { %p2548_p3 = scmp.ne.s32.totalorder %s110_s28, %s2547_s5  ;;  %p2553_p5 = scmp.lt.s32.totalorder %s2547_s5, %s2547_s5 }
  0x81   :  { %p2554_p6 = por %p2553_p5, %p2552_p4 }
  0x83   :  { %p2555_p7 = pnand %p2554_p6, %p2548_p3 }
  0x85   :  { %2558 = shalt.err (!%p2555_p7)
}
  0x86   :  { %115 = dma.hbm_to_vmem [thread:$0]  %s3070_s7, 2048, %s110_s28, [#allocation15], %s2618_s19, %s2618_s19, %s2619_s20  }
  0x87   :  { %2603 = dma.done.wait [#allocation3], 128  }
  0x88   :  { %2604 = vsyncadd [#allocation3], 4294967168 }
  0x89   :  { %2605 = dma.done.wait [#allocation6], 4096  }
  0x8a   :  { %2606 = vsyncadd [#allocation6], 4294963200 }
  0x8b   :  { %2607 = dma.done.wait [#allocation9], 4096  }
  0x8c   :  { %2608 = vsyncadd [#allocation9], 4294963200 }
  0x8d   :  { %2609 = dma.done.wait [#allocation12], 4096  }
  0x8e   :  { %2610 = vsyncadd [#allocation12], 4294963200 }
  0x8f   :  { %2611 = dma.done.wait [#allocation15], 2048  }
  0x90   :  { %2612 = vsyncadd [#allocation15], 4294965248  ;;  %v2627_v0 = vmov 0.0|0.0   ;;  %vm2628_vm0 = vmmov 0   ;;  %v2629_v1 = vmov 0.0   ;;  %v157_v2 = vld [vmem:[#allocation5] sm:$0xff] }
  0x91   :  { %2012 = vmatprep.subr.bf16.mxu1 %v2627_v0  ;;  %1554 = vmatprep.mubr.msk.f32.mxu1 %vm2628_vm0, %v2629_v1  ;;  %v158_v3 = vld [vmem:[#allocation5 + $0x8] sm:$0xff]  ;;  %v159_v4 = vld [vmem:[#allocation5 + $0x10] sm:$0xff]  ;;  %v160_v6 = vld [vmem:[#allocation5 + $0x18] sm:$0xff]  ;;  %s2630_s7 = smov [#allocation16]  }
  0x92   :  { %2060 = vmatprep.subr.bf16.mxu0 %v2627_v0  ;;  %1624 = vmatprep.mubr.msk.f32.mxu0 %vm2628_vm0, %v2629_v1  ;;  %v2013_v5 = vpack.c.bf16 %v158_v3, %v157_v2  ;;  %v2016_v7 = vpack.c.bf16 %v160_v6, %v159_v4  ;;  %v161_v8 = vld [vmem:[#allocation5 + $0x20] sm:$0xff]  ;;  %v162_v9 = vld [vmem:[#allocation5 + $0x28] sm:$0xff]  ;;  %v163_v13 = vld [vmem:[#allocation5 + $0x30] sm:$0xff]  ;;  %s1257_s19 = sshll.u32 %s2630_s7, 4  ;;  %s1258_s19 = int_to_ptr.vmem [resolvable:$true] %s1257_s19 }
  0x93   :  { %v141_v10 = vld [vmem:[#allocation7] sm:$0xff]  ;;  %v142_v11 = vld [vmem:[#allocation7 + $0x8] sm:$0xff]  ;;  %v2019_v12 = vpack.c.bf16 %v162_v9, %v161_v8  ;;  %v164_v15 = vld [vmem:[#allocation5 + $0x38] sm:$0xff]  ;;  %s2559_s20 = scalar_lea.vmem %s1258_s19, 128  ;;  %p2564_p9 = scmp.lt.s32.totalorder %s1258_s19, %s1258_s19 }
  0x94   :  { %2014 = vmatpush3.bf16.msra.mxu1 %v2013_v5  ;;  %v2806_v14 = vpack.c.bf16 %v142_v11, %v141_v10  ;;  %v143_v16 = vld [vmem:[#allocation7 + $0x10] sm:$0xff]  ;;  %v144_v17 = vld [vmem:[#allocation7 + $0x18] sm:$0xff]  ;;  %v2022_v18 = vpack.c.bf16 %v164_v15, %v163_v13  ;;  %v165_v19 = vld [vmem:[#allocation5 + $0x40] sm:$0xff]  ;;  %p2560_p8 = scmp.ne.s32.totalorder %s1258_s19, %s2559_s20  ;;  %p2565_p10 = scmp.lt.s32.totalorder %s2559_s20, %s2559_s20 }
  0x95   :  { %2015 = vmatprep.subr.bf16.mxu1 %v2627_v0  ;;  %v2811_v20 = vpack.c.bf16 %v144_v17, %v143_v16  ;;  %v166_v21 = vld [vmem:[#allocation5 + $0x48] sm:$0xff]  ;;  %v145_v22 = vld [vmem:[#allocation7 + $0x20] sm:$0xff]  ;;  %v167_v25 = vld [vmem:[#allocation5 + $0x50] sm:$0xff] }
  0x96   :  { %2062 = vmatpush3.bf16.msra.mxu0 %v2806_v14  ;;  %v146_v23 = vld [vmem:[#allocation7 + $0x28] sm:$0xff]  ;;  %v2025_v24 = vpack.c.bf16 %v166_v21, %v165_v19  ;;  %v168_v27 = vld [vmem:[#allocation5 + $0x58] sm:$0xff]  ;;  %v147_v28 = vld [vmem:[#allocation7 + $0x30] sm:$0xff]  ;;  %p2566_p11 = por %p2565_p10, %p2564_p9 }
  0x97   :  { %2063 = vmatprep.subr.bf16.mxu0 %v2627_v0  ;;  %v2816_v26 = vpack.c.bf16 %v146_v23, %v145_v22  ;;  %v148_v29 = vld [vmem:[#allocation7 + $0x38] sm:$0xff]  ;;  %v2028_v30 = vpack.c.bf16 %v168_v27, %v167_v25  ;;  %v169_v31 = vld [vmem:[#allocation5 + $0x60] sm:$0xff]  ;;  %v170_v33 = vld [vmem:[#allocation5 + $0x68] sm:$0xff] }
  0x98   :  { %2017 = vmatpush3.bf16.msra.mxu1 %v2016_v7  ;;  %v2821_v32 = vpack.c.bf16 %v148_v29, %v147_v28  ;;  %v149_v34 = vld [vmem:[#allocation7 + $0x40] sm:$0xff]  ;;  %v150_v35 = vld [vmem:[#allocation7 + $0x48] sm:$0xff]  ;;  %v2031_v36 = vpack.c.bf16 %v170_v33, %v169_v31  ;;  %v171_v37 = vld [vmem:[#allocation5 + $0x70] sm:$0xff]  ;;  %p2567_p12 = pnand %p2566_p11, %p2560_p8 }
  0x99   :  { %2018 = vmatprep.subr.bf16.mxu1 %v2627_v0  ;;  %v2826_v38 = vpack.c.bf16 %v150_v35, %v149_v34  ;;  %v172_v39 = vld [vmem:[#allocation5 + $0x78] sm:$0xff]  ;;  %v151_v40 = vld [vmem:[#allocation7 + $0x50] sm:$0xff]  ;;  %v153_v44 = vld [vmem:[#allocation7 + $0x60] sm:$0xff] }
  0x9a   :  { %2065 = vmatpush3.bf16.msra.mxu0 %v2811_v20  ;;  %v152_v41 = vld [vmem:[#allocation7 + $0x58] sm:$0xff]  ;;  %v2034_v42 = vpack.c.bf16 %v172_v39, %v171_v37  ;;  %v154_v45 = vld [vmem:[#allocation7 + $0x68] sm:$0xff]  ;;  %v155_v48 = vld [vmem:[#allocation7 + $0x70] sm:$0xff] }
  0x9b   :  { %2066 = vmatprep.subr.bf16.mxu0 %v2627_v0  ;;  %v2831_v43 = vpack.c.bf16 %v152_v41, %v151_v40  ;;  %v2836_v46 = vld [vmem:[#allocation2] sm:$0xff]  ;;  %v2838_v47 = vpack.c.bf16 %v154_v45, %v153_v44  ;;  %v835_v15 = vld [vmem:[#allocation10] sm:$0xff]  ;;  %v836_v16 = vld [vmem:[#allocation10 + $0x8] sm:$0xff] }
  0x9c   :  { %2020 = vmatpush3.bf16.msra.mxu1 %v2019_v12  ;;  %v156_v49 = vld [vmem:[#allocation7 + $0x78] sm:$0xff]  ;;  %v837_v17 = vld [vmem:[#allocation10 + $0x10] sm:$0xff]  ;;  %v839_v21 = vld [vmem:[#allocation10 + $0x20] sm:$0xff] }
  0x9d   :  { %2021 = vmatprep.subr.bf16.mxu1 %v2627_v0  ;;  %v2845_v50 = vpack.c.bf16 %v156_v49, %v155_v48  ;;  %v838_v19 = vld [vmem:[#allocation10 + $0x18] sm:$0xff]  ;;  %v840_v22 = vld [vmem:[#allocation10 + $0x28] sm:$0xff]  ;;  %v843_v27 = vld [vmem:[#allocation10 + $0x40] sm:$0xff] }
  0x9e   :  { %2068 = vmatpush3.bf16.msra.mxu0 %v2816_v26  ;;  %v2235_v23 = vpack.c.bf16 %v840_v22, %v839_v21  ;;  %v842_v25 = vld [vmem:[#allocation10 + $0x38] sm:$0xff]  ;;  %v844_v28 = vld [vmem:[#allocation10 + $0x48] sm:$0xff]  ;;  %v845_v34 = vld [vmem:[#allocation10 + $0x50] sm:$0xff] }
  0x9f   :  { %2069 = vmatprep.subr.bf16.mxu0 %v2627_v0  ;;  %v2241_v29 = vpack.c.bf16 %v844_v28, %v843_v27  ;;  %v846_v35 = vld [vmem:[#allocation10 + $0x58] sm:$0xff]  ;;  %v847_v37 = vld [vmem:[#allocation10 + $0x60] sm:$0xff]  ;;  %v849_v39 = vld [vmem:[#allocation10 + $0x70] sm:$0xff] }
  0xa0   :  { %2023 = vmatpush3.bf16.msra.mxu1 %v2022_v18  ;;  %v2229_v18 = vpack.c.bf16 %v836_v16, %v835_v15  ;;  %v850_v41 = vld [vmem:[#allocation10 + $0x78] sm:$0xff]  ;;  %v992_v44 = vld [vmem:[#allocation11 + $0x8] sm:$0xff]  ;;  %v993_v45 = vld [vmem:[#allocation11 + $0x10] sm:$0xff] }
  0xa1   :  { %2024 = vmatprep.subr.bf16.mxu1 %v2627_v0  ;;  %v994_v48 = vld [vmem:[#allocation11 + $0x18] sm:$0xff]  ;;  %v827_v22 = vld [vmem:[#allocation8 + $0x40] sm:$0xff] }
  0xa2   :  { %2071 = vmatpush3.bf16.msra.mxu0 %v2821_v32  ;;  %v2280_v49 = vpack.c.bf16 %v994_v48, %v993_v45  ;;  %v831_v28 = vld [vmem:[#allocation8 + $0x60] sm:$0xff]  ;;  %v1100_v45 = vld [vmem:[#allocation14 + $0x30] sm:$0xff] }
  0xa3   :  { %2072 = vmatprep.subr.bf16.mxu0 %v2627_v0 }
  0xa4   :  { %2026 = vmatpush3.bf16.msra.mxu1 %v2025_v24  ;;  %v841_v24 = vld [vmem:[#allocation10 + $0x30] sm:$0xff] }
  0xa5   :  { %2027 = vmatprep.subr.bf16.mxu1 %v2627_v0 }
  0xa6   :  { %2074 = vmatpush3.bf16.msra.mxu0 %v2826_v38 }
  0xa7   :  { %2075 = vmatprep.subr.bf16.mxu0 %v2627_v0 }
  0xa8   :  { %2029 = vmatpush3.bf16.msra.mxu1 %v2028_v30 }
  0xa9   :  { %2030 = vmatprep.subr.bf16.mxu1 %v2627_v0 }
  0xaa   :  { %2077 = vmatpush3.bf16.msra.mxu0 %v2831_v43 }
  0xab   :  { %2078 = vmatprep.subr.bf16.mxu0 %v2627_v0 }
  0xac   :  { %2032 = vmatpush3.bf16.msra.mxu1 %v2031_v36  ;;  %v2244_v36 = vpack.c.bf16 %v846_v35, %v845_v34  ;;  %v1094_v34 = vld [vmem:[#allocation14] sm:$0xff]  ;;  %v1095_v35 = vld [vmem:[#allocation14 + $0x8] sm:$0xff] }
  0xad   :  { %2033 = vmatprep.subr.bf16.mxu1 %v2627_v0 }
  0xae   :  { %2080 = vmatpush3.bf16.msra.mxu0 %v2838_v47 }
  0xaf   :  { %2081 = vmatprep.subr.bf16.mxu0 %v2627_v0 }
  0xb0   :  { %2035 = vmatpush3.bf16.msra.mxu1 %v2034_v42  ;;  %v2250_v42 = vpack.c.bf16 %v850_v41, %v849_v39 }
  0xb1   :  { %2036 = vmatprep.subr.bf16.mxu1 %v2627_v0 }
  0xb2   :  { %2083 = vmatpush3.bf16.msra.mxu0 %v2845_v50 }
  0xb3   :  { %1555 = vmatmul.mubr.f32.vlgmr.msra.gmra.mrb[0].mxu1 %v2836_v46  ;;  %2108 = vmatprep.subr.bf16.mxu0 %v2627_v0 }
  0xb4   :  { %2038 = vmatpush3.bf16.msra.mxu1 %v2806_v14  ;;  %1589 = vmatprep.mubr.msk.f32.mxu1 %vm2628_vm0, %v2629_v1 }
  0xb5   :  { %2039 = vmatprep.subr.bf16.mxu1 %v2627_v0 }
  0xb8   :  { %2041 = vmatpush3.bf16.msra.mxu1 %v2811_v20 }
  0xb9   :  { %2042 = vmatprep.subr.bf16.mxu1 %v2627_v0 }
  0xbc   :  { %2044 = vmatpush3.bf16.msra.mxu1 %v2816_v26 }
  0xbd   :  { %2045 = vmatprep.subr.bf16.mxu1 %v2627_v0 }
  0xc0   :  { %2047 = vmatpush3.bf16.msra.mxu1 %v2821_v32 }
  0xc1   :  { %2048 = vmatprep.subr.bf16.mxu1 %v2627_v0 }
  0xc4   :  { %2050 = vmatpush3.bf16.msra.mxu1 %v2826_v38 }
  0xc5   :  { %2051 = vmatprep.subr.bf16.mxu1 %v2627_v0 }
  0xc8   :  { %2053 = vmatpush3.bf16.msra.mxu1 %v2831_v43 }
  0xc9   :  { %2054 = vmatprep.subr.bf16.mxu1 %v2627_v0 }
  0xcc   :  { %2056 = vmatpush3.bf16.msra.mxu1 %v2838_v47 }
  0xcd   :  { %2057 = vmatprep.subr.bf16.mxu1 %v2627_v0 }
  0xd0   :  { %2059 = vmatpush3.bf16.msra.mxu1 %v2845_v50 }
  0xd1   :  { %2084 = vmatprep.subr.bf16.mxu1 %v2627_v0 }
  0xd3   :  { %1590 = vmatmul.mubr.f32.vlgmr.msra.gmra.mrb[2].mxu1 %v2629_v1 }
  0xd4   :  { %2086 = vmatpush3.bf16.msra.mxu1 %v2806_v14  ;;  %1659 = vmatprep.mubr.msk.f32.mxu1 %vm2628_vm0, %v2629_v1 }
  0xd5   :  { %2087 = vmatprep.subr.bf16.mxu1 %v2627_v0 }
  0xd8   :  { %2089 = vmatpush3.bf16.msra.mxu1 %v2811_v20 }
  0xd9   :  { %2090 = vmatprep.subr.bf16.mxu1 %v2627_v0 }
  0xdc   :  { %2092 = vmatpush3.bf16.msra.mxu1 %v2816_v26 }
  0xdd   :  { %2093 = vmatprep.subr.bf16.mxu1 %v2627_v0 }
  0xe0   :  { %2095 = vmatpush3.bf16.msra.mxu1 %v2821_v32 }
  0xe1   :  { %2096 = vmatprep.subr.bf16.mxu1 %v2627_v0 }
  0xe4   :  { %2098 = vmatpush3.bf16.msra.mxu1 %v2826_v38 }
  0xe5   :  { %2099 = vmatprep.subr.bf16.mxu1 %v2627_v0 }
  0xe8   :  { %2101 = vmatpush3.bf16.msra.mxu1 %v2831_v43 }
  0xe9   :  { %2102 = vmatprep.subr.bf16.mxu1 %v2627_v0 }
  0xec   :  { %2104 = vmatpush3.bf16.msra.mxu1 %v2838_v47 }
  0xed   :  { %2105 = vmatprep.subr.bf16.mxu1 %v2627_v0 }
  0xf0   :  { %2107 = vmatpush3.bf16.msra.mxu1 %v2845_v50 }
  0xf1   :  { %2132 = vmatprep.subr.bf16.mxu1 %v2627_v0 }
 0x186   :  { %v2885_v51 = vpop.f32.mrb[0].mxu1 }
 0x187   :  { %v1556_v52 = vpop.f32.mrb[1].mxu1 }
 0x188   :  { %v996_v52 = vld [vmem:[#allocation11 + $0x28] sm:$0xff] }
 0x1a6   :  { %v309_v53 = vpop.f32.mrb[2].mxu1 }
 0x1a7   :  { %v313_v54 = vadd.f32 %v309_v53, %v2885_v51  ;;  %v1591_v55 = vpop.f32.mrb[3].mxu1 }
 0x1a8   :  { %v998_v55 = vld [vmem:[#allocation11 + $0x38] sm:$0xff] }
 0x1a9   :  { %2367 = vtanh.f32 %v313_v54  ;;  %v997_v54 = vld [vmem:[#allocation11 + $0x30] sm:$0xff] }
 0x1b3   :  { %v2368_v56 = vpop.eup %2367 }
 0x1b4   :  { %1625 = vmatmul.mubr.f32.vlgmr.msra.gmra.mrb[0].mxu0 %v2368_v56  ;;  %v2286_v56 = vpack.c.bf16 %v998_v55, %v997_v54  ;;  %v1105_v54 = vld [vmem:[#allocation14 + $0x58] sm:$0xff] }
 0x1b5   :  { %2110 = vmatpush3.bf16.msra.mxu0 %v2806_v14  ;;  %1694 = vmatprep.mubr.msk.f32.mxu0 %vm2628_vm0, %v2629_v1 }
 0x1b6   :  { %2111 = vmatprep.subr.bf16.mxu0 %v2627_v0 }
 0x1b9   :  { %2113 = vmatpush3.bf16.msra.mxu0 %v2811_v20 }
 0x1ba   :  { %2114 = vmatprep.subr.bf16.mxu0 %v2627_v0 }
 0x1bd   :  { %2116 = vmatpush3.bf16.msra.mxu0 %v2816_v26 }
 0x1be   :  { %2117 = vmatprep.subr.bf16.mxu0 %v2627_v0 }
 0x1c1   :  { %2119 = vmatpush3.bf16.msra.mxu0 %v2821_v32 }
 0x1c2   :  { %2120 = vmatprep.subr.bf16.mxu0 %v2627_v0 }
 0x1c5   :  { %2122 = vmatpush3.bf16.msra.mxu0 %v2826_v38 }
 0x1c6   :  { %2123 = vmatprep.subr.bf16.mxu0 %v2627_v0 }
 0x1c9   :  { %2125 = vmatpush3.bf16.msra.mxu0 %v2831_v43 }
 0x1ca   :  { %2126 = vmatprep.subr.bf16.mxu0 %v2627_v0 }
 0x1cd   :  { %2128 = vmatpush3.bf16.msra.mxu0 %v2838_v47 }
 0x1ce   :  { %2129 = vmatprep.subr.bf16.mxu0 %v2627_v0 }
 0x1d1   :  { %2131 = vmatpush3.bf16.msra.mxu0 %v2845_v50 }
 0x1d2   :  { %2156 = vmatprep.subr.bf16.mxu0 %v2627_v0 }
 0x287   :  { %v381_v57 = vpop.f32.mrb[0].mxu0 }
 0x288   :  { %v385_v58 = vadd.f32 %v381_v57, %v2885_v51  ;;  %v1626_v59 = vpop.f32.mrb[1].mxu0  ;;  %v999_v57 = vld [vmem:[#allocation11 + $0x40] sm:$0xff] }
 0x28a   :  { %2369 = vtanh.f32 %v385_v58  ;;  %v1000_v58 = vld [vmem:[#allocation11 + $0x48] sm:$0xff] }
 0x28b   :  { %v2289_v59 = vpack.c.bf16 %v1000_v58, %v999_v57  ;;  %v1107_v57 = vld [vmem:[#allocation14 + $0x68] sm:$0xff] }
 0x294   :  { %v2370_v60 = vpop.eup %2369 }
 0x295   :  { %1660 = vmatmul.mubr.f32.vlgmr.msra.gmra.mrb[4].mxu1 %v2370_v60  ;;  %v1001_v60 = vld [vmem:[#allocation11 + $0x50] sm:$0xff] }
 0x296   :  { %2134 = vmatpush3.bf16.msra.mxu1 %v2806_v14  ;;  %1729 = vmatprep.mubr.msk.f32.mxu1 %vm2628_vm0, %v2629_v1 }
 0x297   :  { %2135 = vmatprep.subr.bf16.mxu1 %v2627_v0 }
 0x29a   :  { %2137 = vmatpush3.bf16.msra.mxu1 %v2811_v20 }
 0x29b   :  { %2138 = vmatprep.subr.bf16.mxu1 %v2627_v0 }
 0x29e   :  { %2140 = vmatpush3.bf16.msra.mxu1 %v2816_v26 }
 0x29f   :  { %2141 = vmatprep.subr.bf16.mxu1 %v2627_v0 }
 0x2a2   :  { %2143 = vmatpush3.bf16.msra.mxu1 %v2821_v32 }
 0x2a3   :  { %2144 = vmatprep.subr.bf16.mxu1 %v2627_v0 }
 0x2a6   :  { %2146 = vmatpush3.bf16.msra.mxu1 %v2826_v38 }
 0x2a7   :  { %2147 = vmatprep.subr.bf16.mxu1 %v2627_v0 }
 0x2aa   :  { %2149 = vmatpush3.bf16.msra.mxu1 %v2831_v43 }
 0x2ab   :  { %2150 = vmatprep.subr.bf16.mxu1 %v2627_v0 }
 0x2ae   :  { %2152 = vmatpush3.bf16.msra.mxu1 %v2838_v47 }
 0x2af   :  { %2153 = vmatprep.subr.bf16.mxu1 %v2627_v0 }
 0x2b2   :  { %2155 = vmatpush3.bf16.msra.mxu1 %v2845_v50 }
 0x2b3   :  { %2180 = vmatprep.subr.bf16.mxu1 %v2627_v0 }
 0x368   :  { %v453_v61 = vpop.f32.mrb[4].mxu1 }
 0x369   :  { %v457_v62 = vadd.f32 %v453_v61, %v2885_v51  ;;  %v1661_v63 = vpop.f32.mrb[5].mxu1  ;;  %v1002_v61 = vld [vmem:[#allocation11 + $0x58] sm:$0xff] }
 0x36a   :  { %v1003_v63 = vld [vmem:[#allocation11 + $0x60] sm:$0xff] }
 0x36b   :  { %2371 = vtanh.f32 %v457_v62  ;;  %v2292_v62 = vpack.c.bf16 %v1002_v61, %v1001_v60  ;;  %v1109_v60 = vld [vmem:[#allocation14 + $0x78] sm:$0xff] }
 0x375   :  { %v2372_v2 = vpop.eup %2371 }
 0x376   :  { %1695 = vmatmul.mubr.f32.vlgmr.msra.gmra.mrb[2].mxu0 %v2372_v2  ;;  %v1004_v2 = vld [vmem:[#allocation11 + $0x68] sm:$0xff] }
 0x377   :  { %2158 = vmatpush3.bf16.msra.mxu0 %v2806_v14  ;;  %1764 = vmatprep.mubr.msk.f32.mxu0 %vm2628_vm0, %v2629_v1 }
 0x378   :  { %2159 = vmatprep.subr.bf16.mxu0 %v2627_v0 }
 0x37b   :  { %2161 = vmatpush3.bf16.msra.mxu0 %v2811_v20 }
 0x37c   :  { %2162 = vmatprep.subr.bf16.mxu0 %v2627_v0 }
 0x37f   :  { %2164 = vmatpush3.bf16.msra.mxu0 %v2816_v26 }
 0x380   :  { %2165 = vmatprep.subr.bf16.mxu0 %v2627_v0 }
 0x383   :  { %2167 = vmatpush3.bf16.msra.mxu0 %v2821_v32 }
 0x384   :  { %2168 = vmatprep.subr.bf16.mxu0 %v2627_v0 }
 0x387   :  { %2170 = vmatpush3.bf16.msra.mxu0 %v2826_v38 }
 0x388   :  { %2171 = vmatprep.subr.bf16.mxu0 %v2627_v0 }
 0x38b   :  { %2173 = vmatpush3.bf16.msra.mxu0 %v2831_v43 }
 0x38c   :  { %2174 = vmatprep.subr.bf16.mxu0 %v2627_v0 }
 0x38f   :  { %2176 = vmatpush3.bf16.msra.mxu0 %v2838_v47 }
 0x390   :  { %2177 = vmatprep.subr.bf16.mxu0 %v2627_v0 }
 0x393   :  { %2179 = vmatpush3.bf16.msra.mxu0 %v2845_v50 }
 0x394   :  { %2204 = vmatprep.subr.bf16.mxu0 %v2627_v0 }
 0x449   :  { %v525_v3 = vpop.f32.mrb[2].mxu0 }
 0x44a   :  { %v529_v4 = vadd.f32 %v525_v3, %v2885_v51  ;;  %v1696_v5 = vpop.f32.mrb[3].mxu0  ;;  %v2295_v3 = vpack.c.bf16 %v1004_v2, %v1003_v63  ;;  %v1079_v63 = vld [vmem:[#allocation13 + $0x8] sm:$0xff] }
 0x44b   :  { %v1006_v5 = vld [vmem:[#allocation11 + $0x78] sm:$0xff] }
 0x44c   :  { %2373 = vtanh.f32 %v529_v4  ;;  %v1005_v4 = vld [vmem:[#allocation11 + $0x70] sm:$0xff] }
 0x456   :  { %v2374_v6 = vpop.eup %2373 }
 0x457   :  { %1730 = vmatmul.mubr.f32.vlgmr.msra.gmra.mrb[6].mxu1 %v2374_v6  ;;  %v2298_v6 = vpack.c.bf16 %v1006_v5, %v1005_v4  ;;  %v1081_v4 = vld [vmem:[#allocation13 + $0x18] sm:$0xff] }
 0x458   :  { %2182 = vmatpush3.bf16.msra.mxu1 %v2806_v14  ;;  %1799 = vmatprep.mubr.msk.f32.mxu1 %vm2628_vm0, %v2629_v1 }
 0x459   :  { %2183 = vmatprep.subr.bf16.mxu1 %v2627_v0 }
 0x45c   :  { %2185 = vmatpush3.bf16.msra.mxu1 %v2811_v20 }
 0x45d   :  { %2186 = vmatprep.subr.bf16.mxu1 %v2627_v0 }
 0x460   :  { %2188 = vmatpush3.bf16.msra.mxu1 %v2816_v26 }
 0x461   :  { %2189 = vmatprep.subr.bf16.mxu1 %v2627_v0 }
 0x464   :  { %2191 = vmatpush3.bf16.msra.mxu1 %v2821_v32 }
 0x465   :  { %2192 = vmatprep.subr.bf16.mxu1 %v2627_v0 }
 0x468   :  { %2194 = vmatpush3.bf16.msra.mxu1 %v2826_v38 }
 0x469   :  { %2195 = vmatprep.subr.bf16.mxu1 %v2627_v0 }
 0x46c   :  { %2197 = vmatpush3.bf16.msra.mxu1 %v2831_v43 }
 0x46d   :  { %2198 = vmatprep.subr.bf16.mxu1 %v2627_v0 }
 0x470   :  { %2200 = vmatpush3.bf16.msra.mxu1 %v2838_v47 }
 0x471   :  { %2201 = vmatprep.subr.bf16.mxu1 %v2627_v0 }
 0x474   :  { %2203 = vmatpush3.bf16.msra.mxu1 %v2845_v50 }
 0x475   :  { %2228 = vmatprep.subr.bf16.mxu1 %v2627_v0 }
 0x52a   :  { %v597_v7 = vpop.f32.mrb[6].mxu1 }
 0x52b   :  { %v601_v8 = vadd.f32 %v597_v7, %v2885_v51  ;;  %v1731_v9 = vpop.f32.mrb[7].mxu1 }
 0x52d   :  { %2375 = vtanh.f32 %v601_v8 }
 0x537   :  { %v2376_v10 = vpop.eup %2375 }
 0x538   :  { %1765 = vmatmul.mubr.f32.vlgmr.msra.gmra.mrb[4].mxu0 %v2376_v10  ;;  %v819_v10 = vld [vmem:[#allocation8] sm:$0xff] }
 0x539   :  { %2206 = vmatpush3.bf16.msra.mxu0 %v2806_v14  ;;  %1834 = vmatprep.mubr.msk.f32.mxu0 %vm2628_vm0, %v2629_v1 }
 0x53a   :  { %2207 = vmatprep.subr.bf16.mxu0 %v2627_v0 }
 0x53d   :  { %2209 = vmatpush3.bf16.msra.mxu0 %v2811_v20  ;;  %v2232_v20 = vpack.c.bf16 %v838_v19, %v837_v17  ;;  %v823_v17 = vld [vmem:[#allocation8 + $0x20] sm:$0xff]  ;;  %v825_v19 = vld [vmem:[#allocation8 + $0x30] sm:$0xff] }
 0x53e   :  { %2210 = vmatprep.subr.bf16.mxu0 %v2627_v0 }
 0x541   :  { %2212 = vmatpush3.bf16.msra.mxu0 %v2816_v26  ;;  %v2238_v26 = vpack.c.bf16 %v842_v25, %v841_v24  ;;  %v829_v25 = vld [vmem:[#allocation8 + $0x50] sm:$0xff] }
 0x542   :  { %2213 = vmatprep.subr.bf16.mxu0 %v2627_v0 }
 0x545   :  { %2215 = vmatpush3.bf16.msra.mxu0 %v2821_v32 }
 0x546   :  { %2216 = vmatprep.subr.bf16.mxu0 %v2627_v0 }
 0x549   :  { %2218 = vmatpush3.bf16.msra.mxu0 %v2826_v38  ;;  %v848_v38 = vld [vmem:[#allocation10 + $0x68] sm:$0xff] }
 0x54a   :  { %2219 = vmatprep.subr.bf16.mxu0 %v2627_v0  ;;  %v2247_v40 = vpack.c.bf16 %v848_v38, %v847_v37  ;;  %v1096_v37 = vld [vmem:[#allocation14 + $0x10] sm:$0xff]  ;;  %v1097_v38 = vld [vmem:[#allocation14 + $0x18] sm:$0xff] }
 0x54b   :  { %v2304_v41 = vpack.c.bf16 %v1097_v38, %v1096_v37 }
 0x54d   :  { %2221 = vmatpush3.bf16.msra.mxu0 %v2831_v43  ;;  %v991_v43 = vld [vmem:[#allocation11] sm:$0xff] }
 0x54e   :  { %2222 = vmatprep.subr.bf16.mxu0 %v2627_v0 }
 0x551   :  { %2224 = vmatpush3.bf16.msra.mxu0 %v2838_v47  ;;  %v2277_v47 = vpack.c.bf16 %v992_v44, %v991_v43  ;;  %v1099_v43 = vld [vmem:[#allocation14 + $0x28] sm:$0xff] }
 0x552   :  { %2225 = vmatprep.subr.bf16.mxu0 %v2627_v0 }
 0x555   :  { %2227 = vmatpush3.bf16.msra.mxu0 %v2845_v50  ;;  %v995_v50 = vld [vmem:[#allocation11 + $0x20] sm:$0xff] }
 0x556   :  { %2276 = vmatprep.subr.bf16.mxu0 %v2627_v0  ;;  %v2283_v53 = vpack.c.bf16 %v996_v52, %v995_v50  ;;  %v1103_v50 = vld [vmem:[#allocation14 + $0x48] sm:$0xff] }
 0x60b   :  { %v669_v11 = vpop.f32.mrb[4].mxu0 }
 0x60c   :  { %v673_v12 = vadd.f32 %v669_v11, %v2885_v51  ;;  %v1766_v13 = vpop.f32.mrb[5].mxu0  ;;  %v820_v11 = vld [vmem:[#allocation8 + $0x8] sm:$0xff] }
 0x60d   :  { %v821_v13 = vld [vmem:[#allocation8 + $0x10] sm:$0xff] }
 0x60e   :  { %2377 = vtanh.f32 %v673_v12  ;;  %v2253_v12 = vpack.c.bf16 %v820_v11, %v819_v10  ;;  %v1085_v10 = vld [vmem:[#allocation13 + $0x38] sm:$0xff] }
 0x618   :  { %v2378_v14 = vpop.eup %2377 }
 0x619   :  { %1800 = vmatmul.mubr.f32.vlgmr.msra.gmra.mrb[8].mxu1 %v2378_v14  ;;  %v822_v14 = vld [vmem:[#allocation8 + $0x18] sm:$0xff] }
 0x61a   :  { %1869 = vmatprep.mubr.msk.f32.mxu1 %vm2628_vm0, %v2629_v1  ;;  %2230 = vmatpush3.bf16.msra.mxu1 %v2229_v18  ;;  %v2256_v16 = vpack.c.bf16 %v822_v14, %v821_v13  ;;  %v1087_v13 = vld [vmem:[#allocation13 + $0x48] sm:$0xff] }
 0x61b   :  { %2231 = vmatprep.subr.bf16.mxu1 %v2627_v0 }
 0x61e   :  { %2233 = vmatpush3.bf16.msra.mxu1 %v2232_v20  ;;  %v826_v20 = vld [vmem:[#allocation8 + $0x38] sm:$0xff] }
 0x61f   :  { %2234 = vmatprep.subr.bf16.mxu1 %v2627_v0  ;;  %v2262_v21 = vpack.c.bf16 %v826_v20, %v825_v19  ;;  %v1092_v19 = vld [vmem:[#allocation13 + $0x70] sm:$0xff]  ;;  %v1093_v20 = vld [vmem:[#allocation13 + $0x78] sm:$0xff] }
 0x622   :  { %2236 = vmatpush3.bf16.msra.mxu1 %v2235_v23  ;;  %v828_v23 = vld [vmem:[#allocation8 + $0x48] sm:$0xff] }
 0x623   :  { %2237 = vmatprep.subr.bf16.mxu1 %v2627_v0  ;;  %v2265_v24 = vpack.c.bf16 %v828_v23, %v827_v22 }
 0x626   :  { %2239 = vmatpush3.bf16.msra.mxu1 %v2238_v26  ;;  %v830_v26 = vld [vmem:[#allocation8 + $0x58] sm:$0xff] }
 0x627   :  { %2240 = vmatprep.subr.bf16.mxu1 %v2627_v0  ;;  %v2268_v27 = vpack.c.bf16 %v830_v26, %v829_v25 }
 0x62a   :  { %2242 = vmatpush3.bf16.msra.mxu1 %v2241_v29  ;;  %v832_v29 = vld [vmem:[#allocation8 + $0x68] sm:$0xff] }
 0x62b   :  { %2243 = vmatprep.subr.bf16.mxu1 %v2627_v0 }
 0x62e   :  { %2245 = vmatpush3.bf16.msra.mxu1 %v2244_v36  ;;  %v2301_v36 = vpack.c.bf16 %v1095_v35, %v1094_v34 }
 0x62f   :  { %2246 = vmatprep.subr.bf16.mxu1 %v2627_v0 }
 0x632   :  { %2248 = vmatpush3.bf16.msra.mxu1 %v2247_v40 }
 0x633   :  { %2249 = vmatprep.subr.bf16.mxu1 %v2627_v0 }
 0x636   :  { %2251 = vmatpush3.bf16.msra.mxu1 %v2250_v42  ;;  %v1098_v42 = vld [vmem:[#allocation14 + $0x20] sm:$0xff] }
 0x637   :  { %2252 = vmatprep.subr.bf16.mxu1 %v2627_v0  ;;  %v2307_v44 = vpack.c.bf16 %v1099_v43, %v1098_v42 }
 0x6ec   :  { %v741_v30 = vpop.f32.mrb[8].mxu1 }
 0x6ed   :  { %v745_v31 = vadd.f32 %v741_v30, %v2885_v51  ;;  %v1801_v32 = vpop.f32.mrb[9].mxu1  ;;  %v2271_v30 = vpack.c.bf16 %v832_v29, %v831_v28 }
 0x6ee   :  { %v834_v32 = vld [vmem:[#allocation8 + $0x78] sm:$0xff] }
 0x6ef   :  { %2379 = vtanh.f32 %v745_v31  ;;  %v833_v31 = vld [vmem:[#allocation8 + $0x70] sm:$0xff] }
 0x6f9   :  { %v2380_v33 = vpop.eup %2379 }
 0x6fa   :  { %1835 = vmatmul.mubr.f32.vlgmr.msra.gmra.mrb[6].mxu0 %v2380_v33  ;;  %v2274_v33 = vpack.c.bf16 %v834_v32, %v833_v31 }
 0x6fb   :  { %1939 = vmatprep.mubr.msk.f32.mxu0 %vm2628_vm0, %v2629_v1  ;;  %2278 = vmatpush3.bf16.msra.mxu0 %v2277_v47  ;;  %v1101_v47 = vld [vmem:[#allocation14 + $0x38] sm:$0xff] }
 0x6fc   :  { %2279 = vmatprep.subr.bf16.mxu0 %v2627_v0  ;;  %v2310_v48 = vpack.c.bf16 %v1101_v47, %v1100_v45 }
 0x6ff   :  { %2281 = vmatpush3.bf16.msra.mxu0 %v2280_v49  ;;  %v1102_v49 = vld [vmem:[#allocation14 + $0x40] sm:$0xff] }
 0x700   :  { %2282 = vmatprep.subr.bf16.mxu0 %v2627_v0  ;;  %v2313_v52 = vpack.c.bf16 %v1103_v50, %v1102_v49 }
 0x703   :  { %2284 = vmatpush3.bf16.msra.mxu0 %v2283_v53  ;;  %v1104_v53 = vld [vmem:[#allocation14 + $0x50] sm:$0xff] }
 0x704   :  { %2285 = vmatprep.subr.bf16.mxu0 %v2627_v0  ;;  %v2316_v55 = vpack.c.bf16 %v1105_v54, %v1104_v53 }
 0x707   :  { %2287 = vmatpush3.bf16.msra.mxu0 %v2286_v56  ;;  %v1106_v56 = vld [vmem:[#allocation14 + $0x60] sm:$0xff] }
 0x708   :  { %2288 = vmatprep.subr.bf16.mxu0 %v2627_v0  ;;  %v2319_v58 = vpack.c.bf16 %v1107_v57, %v1106_v56 }
 0x70b   :  { %2290 = vmatpush3.bf16.msra.mxu0 %v2289_v59  ;;  %v1108_v59 = vld [vmem:[#allocation14 + $0x70] sm:$0xff] }
 0x70c   :  { %2291 = vmatprep.subr.bf16.mxu0 %v2627_v0  ;;  %v2322_v61 = vpack.c.bf16 %v1109_v60, %v1108_v59 }
 0x70f   :  { %2293 = vmatpush3.bf16.msra.mxu0 %v2292_v62  ;;  %v1078_v62 = vld [vmem:[#allocation13] sm:$0xff] }
 0x710   :  { %2294 = vmatprep.subr.bf16.mxu0 %v2627_v0  ;;  %v2325_v2 = vpack.c.bf16 %v1079_v63, %v1078_v62 }
 0x713   :  { %2296 = vmatpush3.bf16.msra.mxu0 %v2295_v3  ;;  %v1080_v3 = vld [vmem:[#allocation13 + $0x10] sm:$0xff] }
 0x714   :  { %2297 = vmatprep.subr.bf16.mxu0 %v2627_v0  ;;  %v2328_v5 = vpack.c.bf16 %v1081_v4, %v1080_v3 }
 0x717   :  { %2299 = vmatpush3.bf16.msra.mxu0 %v2298_v6  ;;  %v1082_v6 = vld [vmem:[#allocation13 + $0x20] sm:$0xff] }
 0x718   :  { %2300 = vmatprep.subr.bf16.mxu0 %v2627_v0 }
 0x7cd   :  { %v813_v7 = vpop.f32.mrb[6].mxu0 }
 0x7ce   :  { %v817_v8 = vadd.f32 %v813_v7, %v2885_v51  ;;  %v1836_v9 = vpop.f32.mrb[7].mxu0  ;;  %v824_v51 = vld [vmem:[#allocation8 + $0x28] sm:$0xff] }
 0x7cf   :  { %v2259_v18 = vpack.c.bf16 %v824_v51, %v823_v17  ;;  %v1083_v7 = vld [vmem:[#allocation13 + $0x28] sm:$0xff]  ;;  %v1084_v9 = vld [vmem:[#allocation13 + $0x30] sm:$0xff]  ;;  %v1090_v17 = vld [vmem:[#allocation13 + $0x60] sm:$0xff] }
 0x7d0   :  { %2381 = vtanh.f32 %v817_v8  ;;  %v2331_v8 = vpack.c.bf16 %v1083_v7, %v1082_v6  ;;  %v2334_v11 = vpack.c.bf16 %v1085_v10, %v1084_v9  ;;  %v1091_v51 = vld [vmem:[#allocation13 + $0x68] sm:$0xff] }
 0x7da   :  { %v3005_v15 = vpop.eup %2381 }
 0x7db   :  { %1870 = vmatmul.mubr.f32.vlgmr.msra.gmra.mrb[10].mxu1 %v3005_v15 }
 0x7dc   :  { %2254 = vmatpush3.bf16.msra.mxu1 %v2253_v12  ;;  %1904 = vmatprep.mubr.msk.f32.mxu1 %vm2628_vm0, %v2629_v1  ;;  %v1086_v12 = vld [vmem:[#allocation13 + $0x40] sm:$0xff] }
 0x7dd   :  { %2255 = vmatprep.subr.bf16.mxu1 %v2627_v0  ;;  %v2337_v14 = vpack.c.bf16 %v1087_v13, %v1086_v12 }
 0x7e0   :  { %2257 = vmatpush3.bf16.msra.mxu1 %v2256_v16 }
 0x7e1   :  { %2258 = vmatprep.subr.bf16.mxu1 %v2627_v0 }
 0x7e4   :  { %2260 = vmatpush3.bf16.msra.mxu1 %v2259_v18  ;;  %v2343_v18 = vpack.c.bf16 %v1091_v51, %v1090_v17 }
 0x7e5   :  { %2261 = vmatprep.subr.bf16.mxu1 %v2627_v0 }
 0x7e8   :  { %2263 = vmatpush3.bf16.msra.mxu1 %v2262_v21  ;;  %v2346_v21 = vpack.c.bf16 %v1093_v20, %v1092_v19 }
 0x7e9   :  { %2264 = vmatprep.subr.bf16.mxu1 %v2627_v0 }
 0x7ec   :  { %2266 = vmatpush3.bf16.msra.mxu1 %v2265_v24 }
 0x7ed   :  { %2267 = vmatprep.subr.bf16.mxu1 %v2627_v0 }
 0x7f0   :  { %2269 = vmatpush3.bf16.msra.mxu1 %v2268_v27 }
 0x7f1   :  { %2270 = vmatprep.subr.bf16.mxu1 %v2627_v0 }
 0x7f4   :  { %2272 = vmatpush3.bf16.msra.mxu1 %v2271_v30 }
 0x7f5   :  { %2273 = vmatprep.subr.bf16.mxu1 %v2627_v0 }
 0x7f8   :  { %2275 = vmatpush3.bf16.msra.mxu1 %v2274_v33 }
 0x7fb   :  { %1905 = vmatmul.mubr.f32.vlgmr.msra.gmra.mrb[10].mxu1 %v2836_v46 }
 0x8ce   :  { %v987_v39 = vpop.f32.mrb[10].mxu1 }
 0x8cf   :  { %v1906_v40 = vpop.f32.mrb[11].mxu1  ;;  %1940 = vmatmul.mubr.f32.vlgmr.msra.gmra.mrb[8].mxu0 %v987_v39 }
 0x8d0   :  { %2302 = vmatpush3.bf16.msra.mxu0 %v2301_v36  ;;  %1974 = vmatprep.mubr.msk.f32.mxu0 %vm2628_vm0, %v2629_v1 }
 0x8d1   :  { %2303 = vmatprep.subr.bf16.mxu0 %v2627_v0 }
 0x8d4   :  { %2305 = vmatpush3.bf16.msra.mxu0 %v2304_v41 }
 0x8d5   :  { %2306 = vmatprep.subr.bf16.mxu0 %v2627_v0 }
 0x8d8   :  { %2308 = vmatpush3.bf16.msra.mxu0 %v2307_v44 }
 0x8d9   :  { %2309 = vmatprep.subr.bf16.mxu0 %v2627_v0 }
 0x8dc   :  { %2311 = vmatpush3.bf16.msra.mxu0 %v2310_v48 }
 0x8dd   :  { %2312 = vmatprep.subr.bf16.mxu0 %v2627_v0 }
 0x8e0   :  { %2314 = vmatpush3.bf16.msra.mxu0 %v2313_v52 }
 0x8e1   :  { %2315 = vmatprep.subr.bf16.mxu0 %v2627_v0 }
 0x8e4   :  { %2317 = vmatpush3.bf16.msra.mxu0 %v2316_v55 }
 0x8e5   :  { %2318 = vmatprep.subr.bf16.mxu0 %v2627_v0 }
 0x8e8   :  { %2320 = vmatpush3.bf16.msra.mxu0 %v2319_v58 }
 0x8e9   :  { %2321 = vmatprep.subr.bf16.mxu0 %v2627_v0 }
 0x8ec   :  { %2323 = vmatpush3.bf16.msra.mxu0 %v2322_v61 }
 0x8ed   :  { %2324 = vmatprep.subr.bf16.mxu0 %v2627_v0 }
 0x8ef   :  { %1975 = vmatmul.mubr.f32.vlgmr.msra.gmra.mrb[10].mxu0 %v3005_v15  ;;  %v1089_v15 = vld [vmem:[#allocation13 + $0x58] sm:$0xff] }
 0x8f0   :  { %2326 = vmatpush3.bf16.msra.mxu0 %v2325_v2  ;;  %2009 = vmatprep.mubr.msk.f32.mxu0 %vm2628_vm0, %v2629_v1  ;;  %v1088_v1 = vld [vmem:[#allocation13 + $0x50] sm:$0xff] }
 0x8f1   :  { %2327 = vmatprep.subr.bf16.mxu0 %v2627_v0  ;;  %v2340_v16 = vpack.c.bf16 %v1089_v15, %v1088_v1 }
 0x8f4   :  { %2329 = vmatpush3.bf16.msra.mxu0 %v2328_v5 }
 0x8f5   :  { %2330 = vmatprep.subr.bf16.mxu0 %v2627_v0 }
 0x8f8   :  { %2332 = vmatpush3.bf16.msra.mxu0 %v2331_v8 }
 0x8f9   :  { %2333 = vmatprep.subr.bf16.mxu0 %v2627_v0 }
 0x8fc   :  { %2335 = vmatpush3.bf16.msra.mxu0 %v2334_v11 }
 0x8fd   :  { %2336 = vmatprep.subr.bf16.mxu0 %v2627_v0 }
 0x900   :  { %2338 = vmatpush3.bf16.msra.mxu0 %v2337_v14 }
 0x901   :  { %2339 = vmatprep.subr.bf16.mxu0 %v2627_v0 }
 0x904   :  { %2341 = vmatpush3.bf16.msra.mxu0 %v2340_v16 }
 0x905   :  { %2342 = vmatprep.subr.bf16.mxu0 %v2627_v0 }
 0x908   :  { %2344 = vmatpush3.bf16.msra.mxu0 %v2343_v18 }
 0x909   :  { %2345 = vmatprep.subr.bf16.mxu0 %v2627_v0 }
 0x90c   :  { %2347 = vmatpush3.bf16.msra.mxu0 %v2346_v21 }
 0x90f   :  { %2010 = vmatmul.mubr.f32.vlgmr.msra.gmra.mrb[10].mxu0 %v2836_v46 }
 0x9a2   :  { %v1073_v22 = vpop.f32.mrb[8].mxu0 }
 0x9a3   :  { %1077 = vst [vmem:[#allocation16] sm:$0xff] %v1073_v22  ;;  %v1941_v23 = vpop.f32.mrb[9].mxu0 }
 0x9a4   :  { %2570 = shalt.err (!%p2567_p12)
}
 0x9a5   :  { %s2571_s30 = scalar_lea.hbm %s3071_s8, 128 }
 0x9a6   :  { %p2572_p13 = scmp.ne.s32.totalorder %s3071_s8, %s2571_s30  ;;  %p2575_p0 = scmp.lt.u32.totalorder %s2571_s30, %s3071_s8 }
 0x9a8   :  { %p2577_p1 = pnand %p2575_p0, %p2572_p13 }
 0x9aa   :  { %2580 = shalt.err (!%p2577_p1)
}
 0x9ab   :  { %1260 = dma.vmem_to_hbm [thread:$0]  %s1258_s19, 128, %s3071_s8, [#allocation4]  }
 0x9ac   :  { %s2631_s25 = smov [#allocation17]  }
 0x9ad   :  { %s1267_s3 = sshll.u32 %s2631_s25, 4  ;;  %s1268_s3 = int_to_ptr.vmem [resolvable:$true] %s1267_s3 }
 0x9ae   :  { %s2581_s24 = scalar_lea.vmem %s1268_s3, 128  ;;  %p2586_p3 = scmp.lt.s32.totalorder %s1268_s3, %s1268_s3 }
 0x9af   :  { %p2582_p2 = scmp.ne.s32.totalorder %s1268_s3, %s2581_s24  ;;  %p2587_p4 = scmp.lt.s32.totalorder %s2581_s24, %s2581_s24 }
 0x9b1   :  { %p2588_p5 = por %p2587_p4, %p2586_p3 }
 0x9b3   :  { %p2589_p6 = pnand %p2588_p5, %p2582_p2 }
 0x9e2   :  { %v1246_v0 = vpop.f32.mrb[10].mxu0 }
 0x9e3   :  { %1250 = vst [vmem:[#allocation17] sm:$0xff] %v1246_v0  ;;  %v2011_v46 = vpop.f32.mrb[11].mxu0 }
 0x9e4   :  { %2592 = shalt.err (!%p2589_p6)
}
 0x9e5   :  { %s2593_s27 = scalar_lea.hbm %s3072_s9, 128 }
 0x9e6   :  { %p2594_p7 = scmp.ne.s32.totalorder %s3072_s9, %s2593_s27  ;;  %p2597_p8 = scmp.lt.u32.totalorder %s2593_s27, %s3072_s9 }
 0x9e8   :  { %p2599_p9 = pnand %p2597_p8, %p2594_p7 }
 0x9ea   :  { %2602 = shalt.err (!%p2599_p9)
}
 0x9eb   :  { %1270 = dma.vmem_to_hbm [thread:$0]  %s1268_s3, 128, %s3072_s9, [#allocation18]  }
 0x9ec   :  { %2613 = dma.done.wait [#allocation4], 128  }
 0x9ed   :  { %2614 = vsyncadd [#allocation4], 4294967168 }
 0x9ee   :  { %2615 = dma.done.wait [#allocation18], 128  }
 0x9ef   :  { %2616 = vsyncadd [#allocation18], 4294967168 }
 0x9f0   :  { %1277 = vsyncpa [#allocation3], 1 }
 0x9f1   :  { %1278 = vsyncpa [#allocation6], 1 }
 0x9f2   :  { %1279 = vsyncpa [#allocation9], 1 }
 0x9f3   :  { %1280 = vsyncpa [#allocation12], 1 }
 0x9f4   :  { %1281 = vsyncpa [#allocation15], 1 }
 0x9f5   :  { %1282 = vsyncpa [#allocation4], 1 }
 0x9f6   :  { %1283 = vsyncpa [#allocation18], 1 }

</bundles_post_ra>
